<compile_context>
chip_gen: v7x
topology: tpu7x:2x2x1
jax: 0.10.0
libtpu: 0.0.40
codegen_flags: <defaults>
</compile_context>

<pallas_src>
import functools
import math

import jax
import jax.numpy as jnp
import numpy as np
from jax import lax
from jax.experimental import pallas as pl
from jax.experimental.pallas import tpu as pltpu


# ---------------------------------------------------------------------------
# helpers
# ---------------------------------------------------------------------------
def _round_up(n, m):
    return ((n + m - 1) // m) * m


def _largest_aligned_divisor(n, cap):
    """Largest multiple-of-8 divisor of n that is <= cap. n must be 8-aligned."""
    cap = max(8, min(cap, n))
    cap -= cap % 8
    for t in range(cap, 7, -8):
        if n % t == 0:
            return t
    return 8


# ---------------------------------------------------------------------------
# Stage 1: QKV projection — three lane-dense dots, scale folded into Q.
# ---------------------------------------------------------------------------
def _qkv_proj_kernel(x_ref, wq_ref, wk_ref, wv_ref, q_ref, k_ref, v_ref, *, scale):
    x = x_ref[...]
    q_ref[...] = (jnp.dot(x, wq_ref[...], preferred_element_type=jnp.float32)
                  * scale).astype(q_ref.dtype)
    k_ref[...] = jnp.dot(x, wk_ref[...],
                         preferred_element_type=jnp.float32).astype(k_ref.dtype)
    v_ref[...] = jnp.dot(x, wv_ref[...],
                         preferred_element_type=jnp.float32).astype(v_ref.dtype)


# ---------------------------------------------------------------------------
# Stage 2: flash-style online-softmax attention (kv tiles innermost).
# ---------------------------------------------------------------------------
def _attention_kernel(q_ref, k_ref, v_ref, o_ref, m_sc, l_sc, acc_sc, *,
                      seq_len, block_kv, needs_mask):
    ki = pl.program_id(2)

    @pl.when(ki == 0)
    def _():
        m_sc[...] = jnp.full_like(m_sc, -jnp.inf)
        l_sc[...] = jnp.zeros_like(l_sc)
        acc_sc[...] = jnp.zeros_like(acc_sc)

    q = q_ref[0]                                       # (tq, E) bf16, pre-scaled
    k = k_ref[0]                                       # (tk, E) bf16
    v = v_ref[0]                                       # (tk, E) bf16

    # bf16 operands, f32 accumulation on the MXU.
    s = jnp.dot(q, k.T, preferred_element_type=jnp.float32)       # (tq, tk)

    if needs_mask:
        kv_pos = ki * block_kv + lax.broadcasted_iota(jnp.int32, s.shape, 1)
        s = jnp.where(kv_pos < seq_len, s, -jnp.inf)

    m_prev = m_sc[...]                                             # (tq, 1)
    m_new = jnp.maximum(m_prev, s.max(axis=-1, keepdims=True))
    alpha = jnp.exp(m_prev - m_new)
    p = jnp.exp(s - m_new)                                         # (tq, tk)

    l_sc[...] = alpha * l_sc[...] + p.sum(axis=-1, keepdims=True)
    acc_sc[...] = alpha * acc_sc[...] + jnp.dot(
        p.astype(v.dtype), v, preferred_element_type=jnp.float32)
    m_sc[...] = m_new

    @pl.when(ki == pl.num_programs(2) - 1)
    def _():
        inv_l = pl.reciprocal(l_sc[...], approx=True)              # EUP slot
        o_ref[0] = (acc_sc[...] * inv_l).astype(o_ref.dtype)


def self_attention(x, wq, wk, wv, *, block_rows=1024, block_q=128, block_kv=256):
    """Forward pass of the torch SelfAttention module.

    x           : (B, S, E) float32
    wq, wk, wv  : (E, E) float32, stored as (in, out)  (== torch Linear weight.T)
    returns     : attended, (B, S, E) float32
    """
    B, S, E = x.shape
    f32, bf16 = jnp.float32, jnp.bfloat16
    scale = 1.0 / math.sqrt(E)       # module divides scores by embed_size ** 0.5

    # Pad the sequence so tiles are 8-aligned and divide evenly; padded KV
    # positions are masked in-kernel, padded rows sliced off at the end.
    S_pad = _round_up(S, 128) if S >= 128 else _round_up(S, 8)
    x = x.astype(f32)
    if S_pad != S:
        x = jnp.pad(x, ((0, 0), (0, S_pad - S), (0, 0)))
    wq = wq.astype(f32)
    wk = wk.astype(f32)
    wv = wv.astype(f32)

    # ---------------- stage 1: QKV projection ----------------
    N = B * S_pad
    x2d = x.reshape(N, E)
    tn = _largest_aligned_divisor(N, block_rows)
    if N // tn < 2 and N >= 16:                 # feed both v7x TensorCores
        tn2 = _largest_aligned_divisor(N, N // 2)
        if N // tn2 >= 2:
            tn = tn2

    w_spec = pl.BlockSpec((E, E), lambda i: (0, 0))
    q2d, k2d, v2d = pl.pallas_call(
        functools.partial(_qkv_proj_kernel, scale=scale),
        grid=(N // tn,),
        in_specs=[pl.BlockSpec((tn, E), lambda i: (i, 0)),
                  w_spec, w_spec, w_spec],
        out_specs=(pl.BlockSpec((tn, E), lambda i: (i, 0)),) * 3,
        out_shape=(jax.ShapeDtypeStruct((N, E), bf16),) * 3,
        compiler_params=pltpu.CompilerParams(
            dimension_semantics=("parallel",),
            vmem_limit_bytes=32 * 1024 * 1024),
        cost_estimate=pl.CostEstimate(
            flops=2 * N * E * 3 * E,
            transcendentals=0,
            bytes_accessed=4 * N * E + 3 * 4 * E * E + 3 * 2 * N * E),
    )(x2d, wq, wk, wv)

    q = q2d.reshape(B, S_pad, E)
    k = k2d.reshape(B, S_pad, E)
    v = v2d.reshape(B, S_pad, E)

    # ---------------- stage 2: attention ----------------
    tq = _largest_aligned_divisor(S_pad, block_q)
    tk = _largest_aligned_divisor(S_pad, block_kv)
    if B * (S_pad // tq) < 2 and S_pad >= 16:   # megacore occupancy when B == 1
        tq2 = _largest_aligned_divisor(S_pad, S_pad // 2)
        if S_pad // tq2 >= 2:
            tq = tq2
    n_q, n_kv = S_pad // tq, S_pad // tk
    needs_mask = (S_pad != S)

    out = pl.pallas_call(
        functools.partial(_attention_kernel, seq_len=S, block_kv=tk,
                          needs_mask=needs_mask),
        grid=(B, n_q, n_kv),
        in_specs=[pl.BlockSpec((1, tq, E), lambda b, qi, ki: (b, qi, 0)),
                  pl.BlockSpec((1, tk, E), lambda b, qi, ki: (b, ki, 0)),
                  pl.BlockSpec((1, tk, E), lambda b, qi, ki: (b, ki, 0))],
        out_specs=pl.BlockSpec((1, tq, E), lambda b, qi, ki: (b, qi, 0)),
        out_shape=jax.ShapeDtypeStruct((B, S_pad, E), f32),
        scratch_shapes=[pltpu.VMEM((tq, 1), f32),     # running max
                        pltpu.VMEM((tq, 1), f32),     # running denom
                        pltpu.VMEM((tq, E), f32)],    # running numerator
        compiler_params=pltpu.CompilerParams(
            dimension_semantics=("parallel", "parallel", "arbitrary"),
            vmem_limit_bytes=32 * 1024 * 1024),
        cost_estimate=pl.CostEstimate(
            flops=4 * B * S_pad * S_pad * E,
            transcendentals=B * S_pad * S_pad,
            # q read once + k/v re-read per q tile (bf16) + f32 output write.
            bytes_accessed=B * S_pad * E * (2 + 2 * 2 * n_q + 4)),
    )(q, k, v)

    if S_pad != S:
        out = out[:, :S, :]
    return out


def self_attention_ref(x, wq, wk, wv):
    """Pure-JAX reference of the torch module (weights already (in, out))."""
    q = x @ wq
    k = x @ wk
    v = x @ wv
    s = jnp.einsum("bqe,bke->bqk", q, k) / math.sqrt(x.shape[-1])
    a = jax.nn.softmax(s, axis=-1)
    return jnp.einsum("bqk,bke->bqe", a, v)


if __name__ == "__main__":
    # Small shapes consistent with the module: embed_size=64, short sequence.
    BATCH, SEQ, EMBED = 2, 8, 64

    key = jax.random.PRNGKey(0)
    kx, kq, kk, kv = jax.random.split(key, 4)
    x = jax.random.normal(kx, (BATCH, SEQ, EMBED), jnp.float32)
    # Weights stored as (in, out) == torch nn.Linear(weight).T ; bias=False.
    wq = jax.random.normal(kq, (EMBED, EMBED), jnp.float32) * 0.1
    wk = jax.random.normal(kk, (EMBED, EMBED), jnp.float32) * 0.1
    wv = jax.random.normal(kv, (EMBED, EMBED), jnp.float32) * 0.1

    attended = self_attention(x, wq, wk, wv)
    attended = jax.block_until_ready(attended)

    ref = self_attention_ref(x, wq, wk, wv)
    np.testing.assert_allclose(np.asarray(attended), np.asarray(ref),
                               rtol=2e-2, atol=2e-2)
    print("KERNEL_OK")
</pallas_src>

<mosaic_0001>
module attributes {stable_mosaic.version = 11 : i64} {
  func.func @_qkv_proj_kernel(%arg0: i32, %arg1: memref<8x64xf32, #tpu.memory_space<vmem>>, %arg2: memref<64x64xf32, #tpu.memory_space<vmem>>, %arg3: memref<64x64xf32, #tpu.memory_space<vmem>>, %arg4: memref<64x64xf32, #tpu.memory_space<vmem>>, %arg5: memref<8x64xbf16, #tpu.memory_space<vmem>>, %arg6: memref<8x64xbf16, #tpu.memory_space<vmem>>, %arg7: memref<8x64xbf16, #tpu.memory_space<vmem>>) attributes {dimension_semantics = [#tpu.dimension_semantics<parallel>], iteration_bounds = array<i64: 2>, scalar_prefetch = 0 : i64, scratch_operands = 0 : i64, tpu.core_type = #tpu.core_type<tc>, window_params = [{transform_indices = @transform_0, window_bounds = array<i64: 8, 64>}, {pipeline_mode = #tpu.pipeline_mode<synchronous>, transform_indices = @transform_1, window_bounds = array<i64: 64, 64>}, {pipeline_mode = #tpu.pipeline_mode<synchronous>, transform_indices = @transform_2, window_bounds = array<i64: 64, 64>}, {pipeline_mode = #tpu.pipeline_mode<synchronous>, transform_indices = @transform_3, window_bounds = array<i64: 64, 64>}, {transform_indices = @transform_4, window_bounds = array<i64: 8, 64>}, {transform_indices = @transform_5, window_bounds = array<i64: 8, 64>}, {transform_indices = @transform_6, window_bounds = array<i64: 8, 64>}]} {
    %c0 = arith.constant 0 : index
    %c0_0 = arith.constant 0 : index
    %0 = vector.load %arg1[%c0, %c0_0] : memref<8x64xf32, #tpu.memory_space<vmem>>, vector<8x64xf32>
    %c0_1 = arith.constant 0 : index
    %c0_2 = arith.constant 0 : index
    %1 = vector.load %arg2[%c0_1, %c0_2] : memref<64x64xf32, #tpu.memory_space<vmem>>, vector<64x64xf32>
    %cst = arith.constant dense<0.000000e+00> : vector<8x64xf32>
    %2 = tpu.matmul %0, %1, %cst {dimension_numbers = #tpu.dot_dimension_numbers<[1], [0], [0], [1], [0, 0, 1, 1], [], []>} : vector<8x64xf32>, vector<64x64xf32>, vector<8x64xf32> -> vector<8x64xf32>
    %cst_3 = arith.constant 1.250000e-01 : f32
    %3 = vector.broadcast %cst_3 : f32 to vector<8x64xf32>
    %4 = arith.mulf %2, %3 : vector<8x64xf32>
    %5 = arith.truncf %4 : vector<8x64xf32> to vector<8x64xbf16>
    %c0_4 = arith.constant 0 : index
    %c0_5 = arith.constant 0 : index
    %6 = vector.load %arg5[%c0_4, %c0_5] : memref<8x64xbf16, #tpu.memory_space<vmem>>, vector<8x64xbf16>
    tpu.vector_store %arg5[%c0_4, %c0_5], %5 {strides = array<i32>} : memref<8x64xbf16, #tpu.memory_space<vmem>>, vector<8x64xbf16>,
    %c0_6 = arith.constant 0 : index
    %c0_7 = arith.constant 0 : index
    %7 = vector.load %arg3[%c0_6, %c0_7] : memref<64x64xf32, #tpu.memory_space<vmem>>, vector<64x64xf32>
    %cst_8 = arith.constant dense<0.000000e+00> : vector<8x64xf32>
    %8 = tpu.matmul %0, %7, %cst_8 {dimension_numbers = #tpu.dot_dimension_numbers<[1], [0], [0], [1], [0, 0, 1, 1], [], []>} : vector<8x64xf32>, vector<64x64xf32>, vector<8x64xf32> -> vector<8x64xf32>
    %9 = arith.truncf %8 : vector<8x64xf32> to vector<8x64xbf16>
    %c0_9 = arith.constant 0 : index
    %c0_10 = arith.constant 0 : index
    %10 = vector.load %arg6[%c0_9, %c0_10] : memref<8x64xbf16, #tpu.memory_space<vmem>>, vector<8x64xbf16>
    tpu.vector_store %arg6[%c0_9, %c0_10], %9 {strides = array<i32>} : memref<8x64xbf16, #tpu.memory_space<vmem>>, vector<8x64xbf16>,
    %c0_11 = arith.constant 0 : index
    %c0_12 = arith.constant 0 : index
    %11 = vector.load %arg4[%c0_11, %c0_12] : memref<64x64xf32, #tpu.memory_space<vmem>>, vector<64x64xf32>
    %cst_13 = arith.constant dense<0.000000e+00> : vector<8x64xf32>
    %12 = tpu.matmul %0, %11, %cst_13 {dimension_numbers = #tpu.dot_dimension_numbers<[1], [0], [0], [1], [0, 0, 1, 1], [], []>} : vector<8x64xf32>, vector<64x64xf32>, vector<8x64xf32> -> vector<8x64xf32>
    %13 = arith.truncf %12 : vector<8x64xf32> to vector<8x64xbf16>
    %c0_14 = arith.constant 0 : index
    %c0_15 = arith.constant 0 : index
    %14 = vector.load %arg7[%c0_14, %c0_15] : memref<8x64xbf16, #tpu.memory_space<vmem>>, vector<8x64xbf16>
    tpu.vector_store %arg7[%c0_14, %c0_15], %13 {strides = array<i32>} : memref<8x64xbf16, #tpu.memory_space<vmem>>, vector<8x64xbf16>,
    return
  }
  func.func @transform_0(%arg0: i32) -> (i32, i32) {
    %c0_i32 = arith.constant 0 : i32
    %c0_i32_0 = arith.constant 0 : i32
    return %arg0, %c0_i32 : i32, i32
  }
  func.func @transform_1(%arg0: i32) -> (i32, i32) {
    %c0_i32 = arith.constant 0 : i32
    %c0_i32_0 = arith.constant 0 : i32
    %c0_i32_1 = arith.constant 0 : i32
    return %c0_i32, %c0_i32_0 : i32, i32
  }
  func.func @transform_2(%arg0: i32) -> (i32, i32) {
    %c0_i32 = arith.constant 0 : i32
    %c0_i32_0 = arith.constant 0 : i32
    %c0_i32_1 = arith.constant 0 : i32
    return %c0_i32, %c0_i32_0 : i32, i32
  }
  func.func @transform_3(%arg0: i32) -> (i32, i32) {
    %c0_i32 = arith.constant 0 : i32
    %c0_i32_0 = arith.constant 0 : i32
    %c0_i32_1 = arith.constant 0 : i32
    return %c0_i32, %c0_i32_0 : i32, i32
  }
  func.func @transform_4(%arg0: i32) -> (i32, i32) {
    %c0_i32 = arith.constant 0 : i32
    %c0_i32_0 = arith.constant 0 : i32
    return %arg0, %c0_i32 : i32, i32
  }
  func.func @transform_5(%arg0: i32) -> (i32, i32) {
    %c0_i32 = arith.constant 0 : i32
    %c0_i32_0 = arith.constant 0 : i32
    return %arg0, %c0_i32 : i32, i32
  }
  func.func @transform_6(%arg0: i32) -> (i32, i32) {
    %c0_i32 = arith.constant 0 : i32
    %c0_i32_0 = arith.constant 0 : i32
    return %arg0, %c0_i32 : i32, i32
  }
}

</mosaic_0001>

<bundles_post_ra>
// kernel: tpu_custom_call.1
= control target key start
LH: loop header
LB: loop body
LE: loop exit
PB: predicated region body
PF: predicated region fallthrough
CT: control target
= control target key end

     0   :  { %s1681_s0 = inlined_call_operand.hbm [shape: f32[16,64], index: 0, kind: input, shape index: {}]   ;;  %s1682_s1 = inlined_call_operand.hbm [shape: f32[64,64], index: 1, kind: input, shape index: {}]   ;;  %s1683_s2 = inlined_call_operand.hbm [shape: f32[64,64], index: 2, kind: input, shape index: {}]   ;;  %s1684_s3 = inlined_call_operand.hbm [shape: f32[64,64], index: 3, kind: input, shape index: {}]   ;;  %s1685_s4 = inlined_call_operand.hbm [shape: bf16[16,64], index: 4, kind: output, shape index: {0}]   ;;  %s1686_s5 = inlined_call_operand.hbm [shape: bf16[16,64], index: 5, kind: output, shape index: {1}]   ;;  %s1687_s6 = inlined_call_operand.hbm [shape: bf16[16,64], index: 6, kind: output, shape index: {2}]  }
   0x1   :  { %1692 = sst [smem:[#allocation19_spill]] %s1681_s0 }
   0x2   :  { %12 = vsyncpa [#allocation3], 0 }
   0x3   :  { %14 = vsyncpa [#allocation3 + $0x1], 0 }
   0x4   :  { %15 = vsyncpa [#allocation6], 0 }
   0x5   :  { %16 = vsyncpa [#allocation9], 0 }
   0x6   :  { %17 = vsyncpa [#allocation4], 0 }
   0x7   :  { %19 = vsyncpa [#allocation4 + $0x1], 0 }
   0x8   :  { %20 = vsyncpa [#allocation12], 0 }
   0x9   :  { %22 = vsyncpa [#allocation12 + $0x1], 0  ;;  %s1322_s21 = smov 0   ;;  %s1324_s22 = smov 0  }
   0xa   :  { %s1326_s23 = smov 0   ;;  %s1328_s24 = smov 0  }
   0xb LB: > { %s1343_s25 = sadd.s32 4294967295, %s1273_s24   ;;  %s1689_s26 = sadd.s32 4294967294, %s1273_s24   ;;  %s1273_s24 = sphi %s1328_s24, %s1715_s24   ;;  %s1269_s23 = sphi %s1326_s23, %s1714_s23   ;;  %s1265_s22 = sphi %s1324_s22, %s1713_s22   ;;  %s1261_s21 = sphi %s1322_s21, %s1712_s21  }
   0xc   : > { %p48_p0 = scmp.ne.s32.totalorder %s1265_s22, %s1261_s21  ;;  %p1688_p1 = scmp.eq.s32.totalorder %s1343_s25, 0 }
   0xd   : > { %p141_p3 = scmp.eq.s32.totalorder %s1689_s26, 1  ;;  %p787_p5 = scmp.ge.s32.totalorder %s1273_s24, 1 }
   0xe   : > { %p1354_p4 = por %p1688_p1, %p48_p0  ;;  %p200_p7 = scmp.lt.s32.totalorder %s1273_s24, 3 }
   0xf   : > { %p1359_p6 = por %p141_p3, %p48_p0  ;;  %s1275_s30 = smov [#allocation5]  }
  0x10   : > { %s1693_s27 = scalar_select %p1354_p4, 1, 0 }
  0x11   : > { %s1694_s28 = scalar_select %p1359_p6, 1, 0 }
  0x12   : > { %p1364_p8 = pnand %p787_p5, %p200_p7  ;;  %s212_s7 = sshll.u32 %s1275_s30, 4  ;;  %s1368_s7 = int_to_ptr.vmem [resolvable:$true] %s212_s7 }
  0x13   : > { %s1276_s9 = smov [#allocation7]   ;;  %s1277_s11 = smov [#allocation8]  }
  0x14   : > { %s1695_s29 = scalar_select %p1364_p8, 1, 0 }
  0x15   : > { %p953_p9 = pneg %p1364_p8  ;;  %s225_s10 = sshll.u32 %s1276_s9, 4  ;;  %s1379_s10 = int_to_ptr.vmem [resolvable:$true] %s225_s10 }
  0x16   : > { %s1381_s12 = sshll.u32 %s1277_s11, 4  ;;  %s1025_s15 = scalar_lea.hbm %s1682_s1, 1024  ;;  %s239_s12 = int_to_ptr.vmem [resolvable:$true] %s1381_s12 }
  0x17   : > { %p1375_p11 = pnand %p953_p9, %p1688_p1  ;;  %p1026_p12 = scmp.ne.s32.totalorder %s1682_s1, %s1025_s15 }
  0x18   : > { %p1032_p5 = scmp.lt.u32.totalorder %s1025_s15, %s1682_s1 }
  0x19   : > { %p1391_p13 = pneg %p1375_p11 }
  0x1b   : > { %p1028_p0 = pnand %p1391_p13, %p1026_p12 }
  0x1d   : > { %p1029_p3 = pneg %p1028_p0 }
  0x1f   : > { %p1034_p7 = pnand %p1032_p5, %p1029_p3 }
  0x21   : > { %1037 = shalt.err (!%p1034_p7)
}
  0x22   : > { %s1038_s30 = scalar_lea.vmem %s1368_s7, 1024  ;;  %p1046_p2 = scmp.lt.s32.totalorder %s1368_s7, %s1368_s7 }
  0x23   : > { %p1039_p9 = scmp.ne.s32.totalorder %s1368_s7, %s1038_s30  ;;  %p1047_p6 = scmp.lt.s32.totalorder %s1038_s30, %s1038_s30 }
  0x25   : > { %p1041_p10 = pnand %p1039_p9, %p1391_p13  ;;  %p1048_p12 = por %p1047_p6, %p1046_p2 }
  0x27   : > { %p1042_p1 = pneg %p1041_p10 }
  0x29   : > { %p1049_p0 = pnand %p1048_p12, %p1042_p1 }
  0x2b   : > { %1052 = shalt.err (!%p1049_p0)
}
  0x2c   : > { %s1278_s9 = smov 128   ;;  %s1279_s11 = smov 8  }
  0x2d   : > { %956 = dma.hbm_to_vmem [thread:$0]  (!%p1375_p11), %s1682_s1, 1024, %s1368_s7, [#allocation6], %s1278_s9, %s1278_s9, %s1279_s11  }
  0x2e   : > { %s1053_s17 = scalar_lea.hbm %s1683_s2, 1024 }
  0x2f   : > { %p1054_p1 = scmp.ne.s32.totalorder %s1683_s2, %s1053_s17  ;;  %p1060_p10 = scmp.lt.u32.totalorder %s1053_s17, %s1683_s2 }
  0x31   : > { %p1056_p2 = pnand %p1054_p1, %p1391_p13 }
  0x33   : > { %p1057_p6 = pneg %p1056_p2 }
  0x35   : > { %p1062_p3 = pnand %p1060_p10, %p1057_p6 }
  0x37   : > { %1065 = shalt.err (!%p1062_p3)
}
  0x38   : > { %s1066_s7 = scalar_lea.vmem %s1379_s10, 1024  ;;  %p1074_p12 = scmp.lt.s32.totalorder %s1379_s10, %s1379_s10 }
  0x39   : > { %p1067_p5 = scmp.ne.s32.totalorder %s1379_s10, %s1066_s7  ;;  %p1075_p0 = scmp.lt.s32.totalorder %s1066_s7, %s1066_s7 }
  0x3b   : > { %p1069_p7 = pnand %p1067_p5, %p1391_p13  ;;  %p1076_p1 = por %p1075_p0, %p1074_p12 }
  0x3d   : > { %p1070_p9 = pneg %p1069_p7 }
  0x3f   : > { %p1077_p2 = pnand %p1076_p1, %p1070_p9 }
  0x41   : > { %1080 = shalt.err (!%p1077_p2)
}
  0x42   : > { %959 = dma.hbm_to_vmem [thread:$0]  (!%p1375_p11), %s1683_s2, 1024, %s1379_s10, [#allocation6], %s1278_s9, %s1278_s9, %s1279_s11  }
  0x43   : > { %s1081_s16 = scalar_lea.hbm %s1684_s3, 1024 }
  0x44   : > { %p1082_p6 = scmp.ne.s32.totalorder %s1684_s3, %s1081_s16  ;;  %p1088_p5 = scmp.lt.u32.totalorder %s1081_s16, %s1684_s3 }
  0x46   : > { %p1084_p10 = pnand %p1082_p6, %p1391_p13 }
  0x48   : > { %p1085_p3 = pneg %p1084_p10 }
  0x4a   : > { %p1090_p7 = pnand %p1088_p5, %p1085_p3 }
  0x4c   : > { %1093 = shalt.err (!%p1090_p7)
}
  0x4d   : > { %s1094_s7 = scalar_lea.vmem %s239_s12, 1024  ;;  %p1102_p1 = scmp.lt.s32.totalorder %s239_s12, %s239_s12 }
  0x4e   : > { %p1095_p9 = scmp.ne.s32.totalorder %s239_s12, %s1094_s7  ;;  %p1103_p2 = scmp.lt.s32.totalorder %s1094_s7, %s1094_s7 }
  0x50   : > { %p1097_p12 = pnand %p1095_p9, %p1391_p13  ;;  %p1104_p4 = por %p1103_p2, %p1102_p1 }
  0x52   : > { %p1098_p0 = pneg %p1097_p12 }
  0x54   : > { %p1105_p8 = pnand %p1104_p4, %p1098_p0 }
  0x56   : > { %1108 = shalt.err (!%p1105_p8)
}
  0x57   : > { %962 = dma.hbm_to_vmem [thread:$0]  (!%p1375_p11), %s1684_s3, 1024, %s239_s12, [#allocation9], %s1278_s9, %s1278_s9, %s1279_s11  }
  0x58   : > { %s1464_s18 = sadd.s32 1, %s1273_s24   ;;  %s35_s13 = sadd.s32 1, %s1269_s23 }
  0x59   : > { %s32_s8 = ssub.s32 %s1273_s24, %s1464_s18  ;;  %p42_p8 = scmp.ne.s32.totalorder %s1269_s23, %s1265_s22 }
  0x5a   : > { %p33_p4 = scmp.eq.s32.totalorder %s32_s8, 0  ;;  %p43_p13 = scmp.eq.s32.totalorder %s1273_s24, 0 }
  0x5b   : > { %p980_p6 = scmp.lt.s32.totalorder %s1273_s24, 2  ;;  %p1698_p3 = scmp.eq.s32.totalorder %s1343_s25, 1 }
  0x5c   : > { %s1474_s14 = scalar_select %p33_p4, %s1269_s23, %s35_s13  }
  0x5d   : > { %p44_p10 = por %p43_p13, %p42_p8  ;;  %p1478_p5 = por %p1698_p3, %p42_p8 }
  0x5e   : > { %s252_s16 = sand.u32 1, %s1269_s23   ;;  %s793_s17 = sshll.u32 %s1273_s24, 7 }
  0x5f   : > { %s792_s12 = sshll.u32 %s252_s16, 3  ;;  %s1700_s0 = sld [smem:[#allocation19_spill]] }
  0x60   : > { %s256_s20 = scalar_lea.vmem [#allocation2], %s792_s12  ;;  %p1489_p11 = pnand %p980_p6, %p44_p10 }
  0x61   : > { %s263_s30 = sshll.u32 %s256_s20, 4  ;;  %s253_s10 = scalar_lea.sflag [#allocation3], %s252_s16  ;;  %s1493_s30 = int_to_ptr.vmem [resolvable:$true] %s263_s30 }
  0x62   : > { %p1111_p9 = pneg %p1489_p11 }
  0x65   : > { %s1487_s19 = scalar_lea.hbm %s1700_s0, %s793_s17  ;;  %s1114_s17 = scalar_lea.hbm %s1700_s0, 256 }
  0x66   : > { %s1109_s26 = scalar_lea.hbm %s1487_s19, 128  ;;  %p1115_p1 = scmp.lt.u32.totalorder %s1487_s19, %s1700_s0 }
  0x67   : > { %p1110_p7 = scmp.ne.s32.totalorder %s1487_s19, %s1109_s26  ;;  %p1116_p2 = scmp.lt.u32.totalorder %s1114_s17, %s1109_s26 }
  0x68   : > { %p1118_p8 = scmp.lt.u32.totalorder %s1109_s26, %s1487_s19 }
  0x69   : > { %p1112_p12 = pnand %p1111_p9, %p1110_p7  ;;  %p1117_p4 = por %p1116_p2, %p1115_p1 }
  0x6b   : > { %p1113_p0 = pneg %p1112_p12  ;;  %p1119_p13 = por %p1118_p8, %p1117_p4 }
  0x6d   : > { %p1120_p6 = pnand %p1119_p13, %p1113_p0 }
  0x6f   : > { %1123 = shalt.err (!%p1120_p6)
}
  0x70   : > { %s1124_s16 = scalar_lea.vmem %s1493_s30, 128  ;;  %s1280_s11 = smov [#allocation2]  }
  0x71   : > { %p1125_p10 = scmp.ne.s32.totalorder %s1493_s30, %s1124_s16  ;;  %s1129_s20 = sshll.u32 %s1280_s11, 4  ;;  %s1130_s20 = int_to_ptr.vmem [resolvable:$false] %s1129_s20 }
  0x72   : > { %s1131_s8 = scalar_lea.vmem %s1130_s20, 256  ;;  %p1132_p12 = scmp.lt.s32.totalorder %s1493_s30, %s1130_s20 }
  0x73   : > { %p1127_p3 = pnand %p1125_p10, %p1111_p9  ;;  %p1133_p1 = scmp.lt.s32.totalorder %s1131_s8, %s1124_s16 }
  0x75   : > { %p1128_p7 = pneg %p1127_p3  ;;  %p1134_p2 = por %p1133_p1, %p1132_p12 }
  0x77   : > { %p1135_p4 = pnand %p1134_p2, %p1128_p7 }
  0x79   : > { %1138 = shalt.err (!%p1135_p4)
}
  0x7a   : > { %966 = dma.hbm_to_vmem [thread:$0]  (!%p1489_p11), %s1487_s19, 128, %s1493_s30, %s253_s10  }
  0x7b   : > { %p1702_p0 = scmp.ne.s32.totalorder %s1695_s29, 0 }
  0x7c   : > { %s1523_s26 = sand.u32 (!%p1702_p0), 1, %s1265_s22   ;;  %p1703_p9 = scmp.ne.s32.totalorder (!%p1702_p0), %s1693_s27, 0 }
  0x7d   : > { %272 = sbr.rel (%p1702_p0) target bundleno = 437 (0x1b5), region = 36  ;;  %s795_s13 = sshll.u32 (!%p1702_p0), %s1523_s26, 3 }
  0x7e   : > { %s275_s17 = scalar_lea.sflag (!%p1702_p0), [#allocation3], %s1523_s26  ;;  %s1527_s12 = scalar_lea.vmem (!%p1702_p0), [#allocation2], %s795_s13 }
  0x84   : > { %1240 = dma.done.wait (%p1703_p9), %s275_s17, 128  }
  0x85   : > { %1242 = vsyncadd (%p1703_p9), %s275_s17, 4294967168  ;;  %p1704_p11 = scmp.eq.s32.totalorder %s1343_s25, 0 }
  0x87   : > { %1244 = dma.done.wait (%p1704_p11), [#allocation6], 2048   ;;  %p1705_p8 = pmov %p1704_p11 }
  0x89   : > { %1246 = vsyncadd (%p1705_p8), [#allocation6], 4294965248  ;;  %p1706_p13 = pmov %p1705_p8 }
  0x8a   : > { %p1707_p6 = pmov %p1705_p8 }
  0x8b   : > { %1248 = dma.done.wait (%p1706_p13), [#allocation9], 1024  }
  0x8c   : > { %1250 = vsyncadd (%p1707_p6), [#allocation9], 4294966272  ;;  %v1281_v0 = vmov 0.0|0.0   ;;  %vm1282_vm0 = vmmov 0   ;;  %v1283_v1 = vmov 0.0   ;;  %v330_v2 = vld [vmem:[#allocation5] sm:$0xff] }
  0x8d   : > { %897 = vmatprep.subr.bf16.mxu0 %v1281_v0  ;;  %909 = vmatprep.subr.bf16.mxu1 %v1281_v0  ;;  %v331_v3 = vld [vmem:[#allocation5 + $0x8] sm:$0xff]  ;;  %v332_v4 = vld [vmem:[#allocation5 + $0x10] sm:$0xff]  ;;  %v333_v6 = vld [vmem:[#allocation5 + $0x18] sm:$0xff]  ;;  %vm338_vm1 = vcmask 523264   ;;  %s1561_s27 = sshll.u32 %s1523_s26, 2  ;;  %s1565_s19 = sshll.u32 %s1343_s25, 6 }
  0x8e   : > { %856 = vmatprep.mubr.msk.f32.mxu0 %vm1282_vm0, %v1283_v1  ;;  %875 = vmatprep.mubr.msk.f32.mxu1 %vm1282_vm0, %v1283_v1  ;;  %v898_v5 = vpack.c.bf16 %v331_v3, %v330_v2  ;;  %v416_v7 = vld [vmem:[#allocation7] sm:$0xff]  ;;  %v901_v8 = vpack.c.bf16 %v333_v6, %v332_v4  ;;  %v417_v10 = vld [vmem:[#allocation7 + $0x8] sm:$0xff]  ;;  %v418_v13 = vld [vmem:[#allocation7 + $0x10] sm:$0xff]  ;;  %s314_s30 = scalar_lea.vmem [#allocation10], %s1561_s27  ;;  %s321_s10 = scalar_lea.vmem [#allocation11], %s1561_s27  ;;  %vm414_vm2 = vcmask 519168  }
  0x8f   : > { %v334_v9 = vld [vmem:[#allocation5 + $0x20] sm:$0xff]  ;;  %v335_v11 = vld [vmem:[#allocation5 + $0x28] sm:$0xff]  ;;  %v910_v12 = vpack.c.bf16 %v417_v10, %v416_v7  ;;  %v419_v14 = vld [vmem:[#allocation7 + $0x18] sm:$0xff]  ;;  %s600_s7 = sshll.u32 %s314_s30, 4  ;;  %s613_s9 = sshll.u32 %s321_s10, 4  ;;  %s1575_s7 = int_to_ptr.vmem [resolvable:$true] %s600_s7  ;;  %s1583_s9 = int_to_ptr.vmem [resolvable:$true] %s613_s9 }
  0x90   : > { %899 = vmatpush3.bf16.msra.mxu0 %v898_v5  ;;  %v913_v15 = vpack.c.bf16 %v419_v14, %v418_v13  ;;  %v904_v16 = vpack.c.bf16 %v335_v11, %v334_v9  ;;  %v420_v17 = vld [vmem:[#allocation7 + $0x20] sm:$0xff]  ;;  %v421_v18 = vld [vmem:[#allocation7 + $0x28] sm:$0xff]  ;;  %v336_v19 = vld [vmem:[#allocation5 + $0x30] sm:$0xff]  ;;  %s1573_s20 = scalar_lea.hbm %s1685_s4, %s1565_s19  ;;  %s1581_s17 = scalar_lea.hbm %s1686_s5, %s1565_s19 }
  0x91   : > { %900 = vmatprep.subr.bf16.mxu0 %v1281_v0  ;;  %911 = vmatpush3.bf16.msra.mxu1 %v910_v12  ;;  %v337_v20 = vld [vmem:[#allocation5 + $0x38] sm:$0xff]  ;;  %v916_v21 = vpack.c.bf16 %v421_v18, %v420_v17  ;;  %v422_v23 = vld [vmem:[#allocation7 + $0x30] sm:$0xff]  ;;  %v496_v25 = vld [vmem:[#allocation8] sm:$0xff]  ;;  %s1139_s16 = scalar_lea.vmem %s1575_s7, 64  ;;  %s1284_s11 = smov [#allocation10]  }
  0x92   : > { %912 = vmatprep.subr.bf16.mxu1 %v1281_v0  ;;  %v907_v22 = vpack.c.bf16 %v337_v20, %v336_v19  ;;  %v423_v24 = vld [vmem:[#allocation7 + $0x38] sm:$0xff]  ;;  %v497_v26 = vld [vmem:[#allocation8 + $0x8] sm:$0xff]  ;;  %v498_v30 = vld [vmem:[#allocation8 + $0x10] sm:$0xff]  ;;  %p1140_p10 = scmp.ne.s32.totalorder %s1575_s7, %s1139_s16  ;;  %s1143_s29 = sshll.u32 %s1284_s11, 4  ;;  %s1144_s29 = int_to_ptr.vmem [resolvable:$false] %s1143_s29 }
  0x93   : > { %v919_v27 = vpack.c.bf16 %v423_v24, %v422_v23  ;;  %v329_v28 = vld [vmem:[%s1527_s12] sm:$0xff]  ;;  %v922_v29 = vpack.c.bf16 %v497_v26, %v496_v25  ;;  %v500_v33 = vld [vmem:[#allocation8 + $0x20] sm:$0xff]  ;;  %v501_v34 = vld [vmem:[#allocation8 + $0x28] sm:$0xff]  ;;  %s577_s12 = scalar_lea.sflag [#allocation4], %s1523_s26  ;;  %s1145_s0 = scalar_lea.vmem %s1144_s29, 128 }
  0x94   : > { %902 = vmatpush3.bf16.msra.mxu0 %v901_v8  ;;  %v499_v31 = vld [vmem:[#allocation8 + $0x18] sm:$0xff]  ;;  %v928_v35 = vpack.c.bf16 %v501_v34, %v500_v33  ;;  %v502_v36 = vld [vmem:[#allocation8 + $0x30] sm:$0xff]  ;;  %p1141_p3 = pnand %p1140_p10, %p1478_p5  ;;  %p1146_p12 = scmp.lt.s32.totalorder %s1575_s7, %s1144_s29 }
  0x95   : > { %903 = vmatprep.subr.bf16.mxu0 %v1281_v0  ;;  %914 = vmatpush3.bf16.msra.mxu1 %v913_v15  ;;  %v925_v32 = vpack.c.bf16 %v499_v31, %v498_v30  ;;  %v503_v37 = vld [vmem:[#allocation8 + $0x38] sm:$0xff]  ;;  %p1147_p1 = scmp.lt.s32.totalorder %s1145_s0, %s1139_s16 }
  0x96   : > { %915 = vmatprep.subr.bf16.mxu1 %v1281_v0  ;;  %v931_v38 = vpack.c.bf16 %v503_v37, %v502_v36  ;;  %p1142_p7 = pneg %p1141_p3 }
  0x97   : > { %p1148_p2 = por %p1147_p1, %p1146_p12 }
  0x98   : > { %905 = vmatpush3.bf16.msra.mxu0 %v904_v16 }
  0x99   : > { %906 = vmatprep.subr.bf16.mxu0 %v1281_v0  ;;  %917 = vmatpush3.bf16.msra.mxu1 %v916_v21  ;;  %p1149_p4 = pnand %p1148_p2, %p1142_p7 }
  0x9a   : > { %918 = vmatprep.subr.bf16.mxu1 %v1281_v0 }
  0x9c   : > { %908 = vmatpush3.bf16.msra.mxu0 %v907_v22 }
  0x9d   : > { %921 = vmatprep.subr.bf16.mxu0 %v1281_v0  ;;  %920 = vmatpush3.bf16.msra.mxu1 %v919_v27 }
  0x9f   : > { %857 = vmatmul.mubr.msk.f32.vlgmr.msra.gmra.mrb[0].mxu0 %vm338_vm1, %v329_v28 }
  0xa0   : > { %923 = vmatpush3.bf16.msra.mxu0 %v922_v29  ;;  %894 = vmatprep.mubr.msk.f32.mxu0 %vm1282_vm0, %v1283_v1 }
  0xa1   : > { %924 = vmatprep.subr.bf16.mxu0 %v1281_v0  ;;  %876 = vmatmul.mubr.msk.f32.vlgmr.msra.gmra.mrb[0].mxu1 %vm338_vm1, %v329_v28 }
  0xa4   : > { %926 = vmatpush3.bf16.msra.mxu0 %v925_v32 }
  0xa5   : > { %927 = vmatprep.subr.bf16.mxu0 %v1281_v0 }
  0xa8   : > { %929 = vmatpush3.bf16.msra.mxu0 %v928_v35 }
  0xa9   : > { %930 = vmatprep.subr.bf16.mxu0 %v1281_v0 }
  0xac   : > { %932 = vmatpush3.bf16.msra.mxu0 %v931_v38 }
  0xaf   : > { %895 = vmatmul.mubr.msk.f32.vlgmr.msra.gmra.mrb[2].mxu0 %vm338_vm1, %v329_v28 }
 0x172   : > { %v408_v39 = vpop.f32.mrb[0].mxu0 }
 0x173   : > { %v412_v40 = vmul.f32 0.125, %v408_v39  ;;  %v858_v41 = vpop.f32.mrb[1].mxu0 }
 0x174   : > { %v490_v43 = vpop.f32.mrb[0].mxu1 }
 0x175   : > { %v413_v42 = vpack.c.bf16 %v412_v40, %v412_v40  ;;  %v494_v44 = vpack.c.bf16 %v490_v43, %v490_v43  ;;  %v877_v45 = vpop.f32.mrb[1].mxu1 }
 0x177   : > { %415 = vst.msk [vmem:[%s314_s30] sm:$0xf] %vm414_vm2, %v413_v42  ;;  %495 = vst.msk [vmem:[%s321_s10] sm:$0xf] %vm414_vm2, %v494_v44 }
 0x178   : > { %1152 = shalt.err (!%p1149_p4)
}
 0x179   : > { %s1153_s26 = scalar_lea.hbm %s1573_s20, 64  ;;  %s1157_s8 = scalar_lea.hbm %s1685_s4, 128 }
 0x17a   : > { %p1154_p0 = scmp.ne.s32.totalorder %s1573_s20, %s1153_s26  ;;  %p1158_p8 = scmp.lt.u32.totalorder %s1573_s20, %s1685_s4 }
 0x17b   : > { %p1159_p13 = scmp.lt.u32.totalorder %s1157_s8, %s1153_s26  ;;  %p1161_p10 = scmp.lt.u32.totalorder %s1153_s26, %s1573_s20 }
 0x17c   : > { %p1155_p9 = pnand %p1154_p0, %p1478_p5 }
 0x17d   : > { %p1160_p6 = por %p1159_p13, %p1158_p8 }
 0x17e   : > { %p1156_p11 = pneg %p1155_p9 }
 0x17f   : > { %p1162_p3 = por %p1161_p10, %p1160_p6 }
 0x181   : > { %p1163_p7 = pnand %p1162_p3, %p1156_p11 }
 0x183   : > { %1166 = shalt.err (!%p1163_p7)
}
 0x184   : > { %947 = dma.vmem_to_hbm [thread:$0]  (%p1478_p5), %s1575_s7, 64, %s1573_s20, %s577_s12  }
 0x185   : > { %s1708_s0 = sand.u32 1, %s1343_s25   ;;  %s1167_s11 = scalar_lea.vmem %s1583_s9, 64 }
 0x186   : > { %s1611_s16 = scalar_lea.sflag [#allocation12], %s1708_s0  ;;  %p1168_p12 = scmp.ne.s32.totalorder %s1583_s9, %s1167_s11 }
 0x187   : > { %s1285_s26 = smov [#allocation11]  }
 0x188   : > { %p1169_p1 = pnand %p1168_p12, %p1478_p5  ;;  %s1171_s30 = sshll.u32 %s1285_s26, 4  ;;  %s1172_s30 = int_to_ptr.vmem [resolvable:$false] %s1171_s30 }
 0x189   : > { %s1173_s10 = scalar_lea.vmem %s1172_s30, 128  ;;  %p1174_p4 = scmp.lt.s32.totalorder %s1583_s9, %s1172_s30 }
 0x18a   : > { %p1170_p2 = pneg %p1169_p1  ;;  %p1175_p0 = scmp.lt.s32.totalorder %s1173_s10, %s1167_s11 }
 0x18c   : > { %p1176_p9 = por %p1175_p0, %p1174_p4 }
 0x18e   : > { %p1177_p11 = pnand %p1176_p9, %p1170_p2 }
 0x190   : > { %1180 = shalt.err (!%p1177_p11)
}
 0x191   : > { %s1181_s25 = scalar_lea.hbm %s1581_s17, 64  ;;  %s1185_s12 = scalar_lea.hbm %s1686_s5, 128 }
 0x192   : > { %p1182_p8 = scmp.ne.s32.totalorder %s1581_s17, %s1181_s25  ;;  %p1186_p10 = scmp.lt.u32.totalorder %s1581_s17, %s1686_s5 }
 0x193   : > { %p1187_p3 = scmp.lt.u32.totalorder %s1185_s12, %s1181_s25  ;;  %p1189_p12 = scmp.lt.u32.totalorder %s1181_s25, %s1581_s17 }
 0x194   : > { %p1183_p13 = pnand %p1182_p8, %p1478_p5 }
 0x195   : > { %p1188_p7 = por %p1187_p3, %p1186_p10 }
 0x196   : > { %p1184_p6 = pneg %p1183_p13 }
 0x197   : > { %p1190_p1 = por %p1189_p12, %p1188_p7 }
 0x199   : > { %p1191_p2 = pnand %p1190_p1, %p1184_p6 }
 0x19b   : > { %1194 = shalt.err (!%p1191_p2)
}
 0x19c   : > { %948 = dma.vmem_to_hbm [thread:$0]  (%p1478_p5), %s1583_s9, 64, %s1581_s17, %s1611_s16   ;;  %v570_v46 = vpop.f32.mrb[2].mxu0 }
 0x19d   : > { %s328_s29 = scalar_lea.vmem [#allocation13], %s1561_s27  ;;  %v574_v47 = vpack.c.bf16 %v570_v46, %v570_v46  ;;  %v896_v48 = vpop.f32.mrb[3].mxu0  ;;  %s1640_s30 = scalar_lea.hbm %s1687_s6, %s1565_s19 }
 0x19e   : > { %s626_s0 = sshll.u32 %s328_s29, 4  ;;  %s1286_s25 = smov [#allocation13]   ;;  %s627_s0 = int_to_ptr.vmem [resolvable:$true] %s626_s0 }
 0x19f   : > { %575 = vst.msk [vmem:[%s328_s29] sm:$0xf] %vm414_vm2, %v574_v47  ;;  %s1195_s10 = scalar_lea.vmem %s627_s0, 64  ;;  %s1199_s9 = sshll.u32 %s1286_s25, 4  ;;  %s1200_s9 = int_to_ptr.vmem [resolvable:$false] %s1199_s9 }
 0x1a0   : > { %p1196_p4 = scmp.ne.s32.totalorder %s627_s0, %s1195_s10  ;;  %s1201_s27 = scalar_lea.vmem %s1200_s9, 128 }
 0x1a1   : > { %p1202_p11 = scmp.lt.s32.totalorder %s627_s0, %s1200_s9  ;;  %p1203_p8 = scmp.lt.s32.totalorder %s1201_s27, %s1195_s10 }
 0x1a2   : > { %p1197_p0 = pnand %p1196_p4, %p1478_p5 }
 0x1a3   : > { %p1204_p13 = por %p1203_p8, %p1202_p11 }
 0x1a4   : > { %p1198_p9 = pneg %p1197_p0 }
 0x1a6   : > { %p1205_p6 = pnand %p1204_p13, %p1198_p9 }
 0x1a8   : > { %1208 = shalt.err (!%p1205_p6)
}
 0x1a9   : > { %s1209_s19 = scalar_lea.hbm %s1640_s30, 64  ;;  %s1213_s20 = scalar_lea.hbm %s1687_s6, 128 }
 0x1aa   : > { %p1210_p10 = scmp.ne.s32.totalorder %s1640_s30, %s1209_s19  ;;  %p1214_p12 = scmp.lt.u32.totalorder %s1640_s30, %s1687_s6 }
 0x1ab   : > { %p1215_p1 = scmp.lt.u32.totalorder %s1213_s20, %s1209_s19  ;;  %p1217_p4 = scmp.lt.u32.totalorder %s1209_s19, %s1640_s30 }
 0x1ac   : > { %p1211_p3 = pnand %p1210_p10, %p1478_p5 }
 0x1ad   : > { %p1216_p2 = por %p1215_p1, %p1214_p12 }
 0x1ae   : > { %p1212_p7 = pneg %p1211_p3 }
 0x1af   : > { %p1218_p0 = por %p1217_p4, %p1216_p2 }
 0x1b1   : > { %p1219_p9 = pnand %p1218_p0, %p1212_p7 }
 0x1b3   : > { %1222 = shalt.err (!%p1219_p9)
}
 0x1b4   : > { %949 = dma.vmem_to_hbm [thread:$0]  (%p1478_p5), %s627_s0, 64, %s1640_s30, %s1611_s16  }
 0x1b5 PF: > { %s638_s13 = sand.u32 1, %s1261_s21   ;;  %p1709_p11 = scmp.ne.s32.totalorder %s1694_s28, 0 }
 0x1b6   : > { %p1710_p8 = scmp.ge.s32.totalorder %s1273_s24, 2  ;;  %s639_s29 = scalar_lea.sflag [#allocation4], %s638_s13 }
 0x1b8   : > { %p968_p13 = pnand %p1710_p8, %p1709_p11 }
 0x1ba   : > { %1252 = dma.done.wait (!%p968_p13), %s639_s29, 64  }
 0x1bb   : > { %1254 = vsyncadd (!%p968_p13), %s639_s29, 4294967232  ;;  %s1711_s11 = sadd.s32 4294967294, %s1273_s24  }
 0x1bc   : > { %s647_s26 = sand.u32 1, %s1711_s11  }
 0x1bd   : > { %s648_s10 = scalar_lea.sflag [#allocation12], %s647_s26 }
 0x1be   : > { %1256 = dma.done.wait (!%p968_p13), %s648_s10, 128  }
 0x1bf   : > { %1258 = vsyncadd (!%p968_p13), %s648_s10, 4294967168  ;;  %p25_p5 = scmp.ge.s32.totalorder %s1464_s18, 4   ;;  %s1712_s21 = smov %s1265_s22 }
 0x1c0   : > { %s1713_s22 = smov %s1269_s23  ;;  %s1714_s23 = smov %s1474_s14 }
 0x1c1   : > { %s1715_s24 = smov %s1464_s18  ;;  %27 = sbr.rel (!%p25_p5) target bundleno = 11 (0xb), region = 125 }
 0x1c8   :  { %662 = vsyncpa [#allocation3], 1 }
 0x1c9   :  { %664 = vsyncpa [#allocation3 + $0x1], 1 }
 0x1ca   :  { %665 = vsyncpa [#allocation6], 1 }
 0x1cb   :  { %666 = vsyncpa [#allocation9], 1 }
 0x1cc   :  { %667 = vsyncpa [#allocation4], 1 }
 0x1cd   :  { %669 = vsyncpa [#allocation4 + $0x1], 1 }
 0x1ce   :  { %670 = vsyncpa [#allocation12], 1 }
 0x1cf   :  { %672 = vsyncpa [#allocation12 + $0x1], 1 }

</bundles_post_ra>
